<compile_context>
chip_gen: v6e
topology: v6e:2x2x1
jax: 0.10.0
libtpu: 0.0.40
codegen_flags: <defaults>
</compile_context>

<pallas_src>
import functools

import jax
import jax.numpy as jnp
from jax.experimental import pallas as pl
from jax.experimental.pallas import tpu as pltpu


def _cost_value_kernel(num_features, xt_ref, wpk_ref, bpk_ref, o_ref):
    """One batch tile: xt_ref (F, TILE_B) bf16 -> o_ref (1, TILE_B) f32.

    wpk_ref: (32, Cmax) bf16 packed weights, rows:
       0:16  -> W_S  (16, F)   (zero-padded past stateDim)
      16:24  -> W_1  (8, 16)
      24:28  -> W_2  (4, 8)
      28:29  -> W_f  (1, 4)
    bpk_ref: (32, 1) f32 packed biases, same row partition.
    """
    x = xt_ref[...]                                              # (F, TB) bf16

    # Layer S: (16, F) @ (F, TB) -> (16, TB), f32 accumulate, bias + ReLU in f32.
    y = jnp.dot(wpk_ref[0:16, 0:num_features], x,
                preferred_element_type=jnp.float32)
    y = jnp.maximum(y + bpk_ref[0:16, :], 0.0)

    # Layer 1: (8, 16) @ (16, TB) -> (8, TB)
    y = jnp.dot(wpk_ref[16:24, 0:16], y.astype(jnp.bfloat16),
                preferred_element_type=jnp.float32)
    y = jnp.maximum(y + bpk_ref[16:24, :], 0.0)

    # Layer 2: (4, 8) @ (8, TB) -> (4, TB)
    y = jnp.dot(wpk_ref[24:28, 0:8], y.astype(jnp.bfloat16),
                preferred_element_type=jnp.float32)
    y = jnp.maximum(y + bpk_ref[24:28, :], 0.0)

    # Final: (1, 4) @ (4, TB) -> (1, TB), no activation.
    out = jnp.dot(wpk_ref[28:29, 0:4], y.astype(jnp.bfloat16),
                  preferred_element_type=jnp.float32)
    o_ref[...] = (out + bpk_ref[28:29, :]).astype(o_ref.dtype)


def pack_params(params, state_dim, num_features):
    """Pack torch-layout params into one bf16 weight slab + one f32 bias column."""
    ws, bs, w1, b1, w2, b2, wf, bf = params           # W: [out, in], b: [out]
    cmax = max(num_features, 16)
    wpk = jnp.zeros((32, cmax), jnp.float32)
    wpk = wpk.at[0:16, 0:state_dim].set(ws)           # extra action cols stay 0
    wpk = wpk.at[16:24, 0:16].set(w1)
    wpk = wpk.at[24:28, 0:8].set(w2)
    wpk = wpk.at[28:29, 0:4].set(wf)
    bpk = jnp.zeros((32, 1), jnp.float32)
    bpk = bpk.at[0:16, 0].set(bs)
    bpk = bpk.at[16:24, 0].set(b1)
    bpk = bpk.at[24:28, 0].set(b2)
    bpk = bpk.at[28, 0].set(bf[0])
    return wpk.astype(jnp.bfloat16), bpk


@functools.partial(jax.jit, static_argnames=("tile_b",))
def cost_value_net_forward(X, wpk, bpk, *, tile_b=512):
    """X: [B, F] (F >= stateDim). Returns [B, 1] float32."""
    B, F = X.shape

    # Don't over-pad tiny batches; keep the tile a multiple of 128 lanes.
    tile_b = min(tile_b, max(128, pl.cdiv(B, 128) * 128))
    nb = pl.cdiv(B, tile_b)
    b_pad = nb * tile_b

    # Layout plumbing: batch on lanes, bf16 matmul input, zero-pad the tail tile.
    xt = jnp.pad(X.astype(jnp.bfloat16).T, ((0, 0), (0, b_pad - B)))  # (F, b_pad)

    out_t = pl.pallas_call(
        functools.partial(_cost_value_kernel, F),
        out_shape=jax.ShapeDtypeStruct((1, b_pad), jnp.float32),
        grid=(nb,),
        in_specs=[
            # Batch-tiled activation stream (pipelined, double-buffered).
            pl.BlockSpec((F, tile_b), lambda i: (0, i)),
            # Packed weights / biases: constant index_map -> fetched once, resident.
            pl.BlockSpec(wpk.shape, lambda i: (0, 0)),
            pl.BlockSpec(bpk.shape, lambda i: (0, 0)),
        ],
        out_specs=pl.BlockSpec((1, tile_b), lambda i: (0, i)),
        compiler_params=pltpu.CompilerParams(
            dimension_semantics=("parallel",)),
    )(xt, wpk, bpk)

    return out_t[0, :B].reshape(B, 1)


def init_params(key, state_dim):
    """Deterministic synthetic parameters, torch Linear layout: W [out, in], b [out]."""
    dims = [(state_dim, 16), (16, 8), (8, 4), (4, 1)]
    params = []
    for i, (d_in, d_out) in enumerate(dims):
        kw, kb = jax.random.split(jax.random.fold_in(key, i))
        bound = float(d_in) ** -0.5
        w = jax.random.uniform(kw, (d_out, d_in), jnp.float32, -bound, bound)
        b = jax.random.uniform(kb, (d_out,), jnp.float32, -bound, bound)
        params += [w, b]
    return tuple(params)


def reference_forward(X, params, state_dim):
    """Pure-JAX reference with the same bf16-input / f32-accumulate numerics."""
    ws, bs, w1, b1, w2, b2, wf, bf = params
    bf16 = jnp.bfloat16
    s = X[:, :state_dim].astype(bf16)
    y = jax.nn.relu(jnp.dot(s, ws.astype(bf16).T,
                            preferred_element_type=jnp.float32) + bs)
    y = jax.nn.relu(jnp.dot(y.astype(bf16), w1.astype(bf16).T,
                            preferred_element_type=jnp.float32) + b1)
    y = jax.nn.relu(jnp.dot(y.astype(bf16), w2.astype(bf16).T,
                            preferred_element_type=jnp.float32) + b2)
    return jnp.dot(y.astype(bf16), wf.astype(bf16).T,
                   preferred_element_type=jnp.float32) + bf


if __name__ == "__main__":
    key = jax.random.PRNGKey(0)

    state_dim = 12      # stateDim of the module
    extra = 4           # X carries extra (e.g. action) columns; weights zero-pad them out
    batch = 1200        # non-multiple of the tile to exercise the remainder path

    k_x, k_p = jax.random.split(key)
    X = jax.random.normal(k_x, (batch, state_dim + extra), jnp.float32)
    params = init_params(k_p, state_dim)
    wpk, bpk = pack_params(params, state_dim, X.shape[1])   # packed once, reused

    out = cost_value_net_forward(X, wpk, bpk, tile_b=512)
    out = jax.block_until_ready(out)

    ref = reference_forward(X, params, state_dim)
    assert out.shape == (batch, 1)
    assert jnp.allclose(out, ref, atol=1e-3, rtol=1e-3), "mismatch vs reference"

    print("KERNEL_OK")
</pallas_src>

<mosaic_0001>
module attributes {stable_mosaic.version = 11 : i64} {
  func.func @_cost_value_kernel(%arg0: i32, %arg1: memref<16x512xbf16, #tpu.memory_space<vmem>>, %arg2: memref<32x16xbf16, #tpu.memory_space<vmem>>, %arg3: memref<32x1xf32, #tpu.memory_space<vmem>>, %arg4: memref<1x512xf32, #tpu.memory_space<vmem>>) attributes {dimension_semantics = [#tpu.dimension_semantics<parallel>], iteration_bounds = array<i64: 3>, scalar_prefetch = 0 : i64, scratch_operands = 0 : i64, tpu.core_type = #tpu.core_type<tc>, window_params = [{transform_indices = @transform_0, window_bounds = array<i64: 16, 512>}, {pipeline_mode = #tpu.pipeline_mode<synchronous>, transform_indices = @transform_1, window_bounds = array<i64: 32, 16>}, {pipeline_mode = #tpu.pipeline_mode<synchronous>, transform_indices = @transform_2, window_bounds = array<i64: 32, 1>}, {transform_indices = @transform_3, window_bounds = array<i64: 1, 512>}]} {
    %c0 = arith.constant 0 : index
    %c0_0 = arith.constant 0 : index
    %0 = vector.load %arg1[%c0, %c0_0] : memref<16x512xbf16, #tpu.memory_space<vmem>>, vector<16x512xbf16>
    %c0_1 = arith.constant 0 : index
    %c0_2 = arith.constant 0 : index
    %1 = vector.load %arg2[%c0_1, %c0_2] : memref<32x16xbf16, #tpu.memory_space<vmem>>, vector<16x16xbf16>
    %cst = arith.constant dense<0.000000e+00> : vector<16x512xf32>
    %2 = tpu.matmul %1, %0, %cst {dimension_numbers = #tpu.dot_dimension_numbers<[1], [0], [0], [1], [0, 0, 1, 1], [], []>} : vector<16x16xbf16>, vector<16x512xbf16>, vector<16x512xf32> -> vector<16x512xf32>
    %c0_3 = arith.constant 0 : index
    %c0_4 = arith.constant 0 : index
    %3 = vector.load %arg3[%c0_3, %c0_4] : memref<32x1xf32, #tpu.memory_space<vmem>>, vector<16x1xf32>
    %4 = vector.broadcast %3 : vector<16x1xf32> to vector<16x512xf32>
    %5 = arith.addf %2, %4 : vector<16x512xf32>
    %cst_5 = arith.constant 0.000000e+00 : f32
    %6 = vector.broadcast %cst_5 : f32 to vector<16x512xf32>
    %7 = arith.maximumf %5, %6 : vector<16x512xf32>
    %c16 = arith.constant 16 : index
    %c0_6 = arith.constant 0 : index
    %8 = vector.load %arg2[%c16, %c0_6] : memref<32x16xbf16, #tpu.memory_space<vmem>>, vector<8x16xbf16>
    %9 = arith.truncf %7 : vector<16x512xf32> to vector<16x512xbf16>
    %cst_7 = arith.constant dense<0.000000e+00> : vector<8x512xf32>
    %10 = tpu.matmul %8, %9, %cst_7 {dimension_numbers = #tpu.dot_dimension_numbers<[1], [0], [0], [1], [0, 0, 1, 1], [], []>} : vector<8x16xbf16>, vector<16x512xbf16>, vector<8x512xf32> -> vector<8x512xf32>
    %c16_8 = arith.constant 16 : index
    %c0_9 = arith.constant 0 : index
    %11 = vector.load %arg3[%c16_8, %c0_9] : memref<32x1xf32, #tpu.memory_space<vmem>>, vector<8x1xf32>
    %12 = vector.broadcast %11 : vector<8x1xf32> to vector<8x512xf32>
    %13 = arith.addf %10, %12 : vector<8x512xf32>
    %cst_10 = arith.constant 0.000000e+00 : f32
    %14 = vector.broadcast %cst_10 : f32 to vector<8x512xf32>
    %15 = arith.maximumf %13, %14 : vector<8x512xf32>
    %c24 = arith.constant 24 : index
    %c0_11 = arith.constant 0 : index
    %16 = vector.load %arg2[%c24, %c0_11] : memref<32x16xbf16, #tpu.memory_space<vmem>>, vector<4x8xbf16>
    %17 = arith.truncf %15 : vector<8x512xf32> to vector<8x512xbf16>
    %cst_12 = arith.constant dense<0.000000e+00> : vector<4x512xf32>
    %18 = tpu.matmul %16, %17, %cst_12 {dimension_numbers = #tpu.dot_dimension_numbers<[1], [0], [0], [1], [0, 0, 1, 1], [], []>} : vector<4x8xbf16>, vector<8x512xbf16>, vector<4x512xf32> -> vector<4x512xf32>
    %c24_13 = arith.constant 24 : index
    %c0_14 = arith.constant 0 : index
    %19 = vector.load %arg3[%c24_13, %c0_14] : memref<32x1xf32, #tpu.memory_space<vmem>>, vector<4x1xf32>
    %20 = vector.broadcast %19 : vector<4x1xf32> to vector<4x512xf32>
    %21 = arith.addf %18, %20 : vector<4x512xf32>
    %cst_15 = arith.constant 0.000000e+00 : f32
    %22 = vector.broadcast %cst_15 : f32 to vector<4x512xf32>
    %23 = arith.maximumf %21, %22 : vector<4x512xf32>
    %c28 = arith.constant 28 : index
    %c0_16 = arith.constant 0 : index
    %24 = vector.load %arg2[%c28, %c0_16] : memref<32x16xbf16, #tpu.memory_space<vmem>>, vector<1x4xbf16>
    %25 = arith.truncf %23 : vector<4x512xf32> to vector<4x512xbf16>
    %cst_17 = arith.constant dense<0.000000e+00> : vector<1x512xf32>
    %26 = tpu.matmul %24, %25, %cst_17 {dimension_numbers = #tpu.dot_dimension_numbers<[1], [0], [0], [1], [0, 0, 1, 1], [], []>} : vector<1x4xbf16>, vector<4x512xbf16>, vector<1x512xf32> -> vector<1x512xf32>
    %c28_18 = arith.constant 28 : index
    %c0_19 = arith.constant 0 : index
    %27 = vector.load %arg3[%c28_18, %c0_19] : memref<32x1xf32, #tpu.memory_space<vmem>>, vector<1x1xf32>
    %28 = vector.broadcast %27 : vector<1x1xf32> to vector<1x512xf32>
    %29 = arith.addf %26, %28 : vector<1x512xf32>
    %c0_20 = arith.constant 0 : index
    %c0_21 = arith.constant 0 : index
    %30 = vector.load %arg4[%c0_20, %c0_21] : memref<1x512xf32, #tpu.memory_space<vmem>>, vector<1x512xf32>
    tpu.vector_store %arg4[%c0_20, %c0_21], %29 {strides = array<i32>} : memref<1x512xf32, #tpu.memory_space<vmem>>, vector<1x512xf32>,
    return
  }
  func.func @transform_0(%arg0: i32) -> (i32, i32) {
    %c0_i32 = arith.constant 0 : i32
    %c0_i32_0 = arith.constant 0 : i32
    return %c0_i32, %arg0 : i32, i32
  }
  func.func @transform_1(%arg0: i32) -> (i32, i32) {
    %c0_i32 = arith.constant 0 : i32
    %c0_i32_0 = arith.constant 0 : i32
    %c0_i32_1 = arith.constant 0 : i32
    return %c0_i32, %c0_i32_0 : i32, i32
  }
  func.func @transform_2(%arg0: i32) -> (i32, i32) {
    %c0_i32 = arith.constant 0 : i32
    %c0_i32_0 = arith.constant 0 : i32
    %c0_i32_1 = arith.constant 0 : i32
    return %c0_i32, %c0_i32_0 : i32, i32
  }
  func.func @transform_3(%arg0: i32) -> (i32, i32) {
    %c0_i32 = arith.constant 0 : i32
    %c0_i32_0 = arith.constant 0 : i32
    return %c0_i32, %arg0 : i32, i32
  }
}

</mosaic_0001>

<bundles_post_ra>
// kernel: cost_value_net_forward.1
= control target key start
LH: loop header
LB: loop body
LE: loop exit
PB: predicated region body
PF: predicated region fallthrough
CT: control target
= control target key end

     0   :  { %s870_s12 = smov 0   ;;  %s872_s13 = smov 0   ;;  %s963_s0 = inlined_call_operand.vmem [shape: bf16[16,1536], index: 0, kind: input, shape index: {}]   ;;  %s964_s1 = inlined_call_operand.vmem [shape: bf16[32,16], index: 1, kind: input, shape index: {}]   ;;  %s965_s2 = inlined_call_operand.vmem [shape: f32[32,1], index: 2, kind: input, shape index: {}]   ;;  %s966_s3 = inlined_call_operand.vmem [shape: f32[1,1536], index: 3, kind: output, shape index: {}]  }
   0x1   :  { %s874_s14 = smov 0  }
   0x2 LB: > { %s757_s15 = sadd.s32 4294967295, %s846_s14   ;;  %s887_s16 = sadd.s32 1, %s846_s14   ;;  %s846_s14 = sphi %s874_s14, %s969_s14   ;;  %s842_s13 = sphi %s872_s13, %s968_s13   ;;  %s838_s12 = sphi %s870_s12, %s967_s12  }
   0x3   : > { %s17_s17 = ssub.s32 %s846_s14, %s887_s16  ;;  %s20_s18 = sadd.s32 1, %s842_s13 }
   0x4   : > { %p18_p0 = scmp.eq.s32.totalorder %s17_s17, 0  ;;  %p27_p1 = scmp.ne.s32.totalorder %s842_s13, %s838_s12 }
   0x5   : > { %p28_p2 = scmp.eq.s32.totalorder %s846_s14, 0  ;;  %p760_p4 = scmp.ge.s32.totalorder %s846_s14, 3 }
   0x6   : > { %s896_s19 = scalar_select %p18_p0, %s842_s13, %s20_s18  }
   0x7   : > { %p29_p3 = por %p28_p2, %p27_p1  ;;  %127 = sbr.rel (%p760_p4) target bundleno = 18 (0x12), region = 24 }
   0xc   : > { %130 = sbr.rel (!%p29_p3) target bundleno = 18 (0x12), region = 28  ;;  %s132_s20 = sand.u32 (%p29_p3), 1, %s842_s13  }
   0xd   : > { %s787_s21 = sshll.u32 (%p29_p3), %s846_s14, 4  ;;  %s761_s22 = sshll.u32 (%p29_p3), %s132_s20, 5 }
   0xe   : > { %s137_s25 = scalar_lea.vmem (%p29_p3), %s963_s0, %s787_s21  ;;  %s134_s26 = scalar_lea.vmem (%p29_p3), [#allocation2], %s761_s22 }
   0xf   : > { %v150_v0 = vld [vmem:[%s137_s25] sm:$0xff] (%p29_p3)  ;;  %v152_v1 = vld [vmem:[%s137_s25 + $0x8] sm:$0xff] (%p29_p3)  ;;  %v154_v2 = vld [vmem:[%s137_s25 + $0x30] sm:$0xff] (%p29_p3) }
  0x10   : > { %151 = vst [vmem:[%s134_s26] sm:$0xff] (%p29_p3), %v150_v0  ;;  %153 = vst [vmem:[%s134_s26 + $0x8] sm:$0xff] (%p29_p3), %v152_v1  ;;  %v156_v3 = vld [vmem:[%s137_s25 + $0x38] sm:$0xff] (%p29_p3) }
  0x11   : > { %155 = vst [vmem:[%s134_s26 + $0x10] sm:$0xff] %v154_v2  ;;  %157 = vst [vmem:[%s134_s26 + $0x18] sm:$0xff] %v156_v3 }
  0x12 PF: > { %p764_p5 = scmp.ge.s32.totalorder %s846_s14, 1  ;;  %p162_p6 = scmp.lt.s32.totalorder %s846_s14, 4 }
  0x14   : > { %p163_p7 = pnand %p764_p5, %p162_p6 }
  0x15   : > { %s169_s27 = sand.u32 (!%p163_p7), 1, %s838_s12   ;;  %s766_s26 = sshll.u32 (!%p163_p7), %s757_s15, 2 }
  0x16   : > { %166 = sbr.rel (%p163_p7) target bundleno = 860 (0x35c), region = 51  ;;  %s765_s28 = sshll.u32 (!%p163_p7), %s169_s27, 5 }
  0x17   : > { %s171_s4 = scalar_lea.vmem (!%p163_p7), [#allocation2], %s765_s28  ;;  %p193_p8 = scmp.lt.s32.totalorder (!%p163_p7), %s766_s26, 11 }
  0x1b   : > { %v848_v4 = vmov 0   ;;  %v204_v5 = vld [vmem:[%s965_s2] sm:$0xff]  ;;  %v818_v7 = vld [vmem:[%s171_s4 + $0xc] ss:$16 sps:$4 sm:$0xff]   ;;  %v821_v9 = vld [vmem:[%s171_s4 + $0x8] ss:$16 sps:$4 sm:$0xff]  }
  0x1c   : > { %277 = vmatprep.mubr.bf16.mxu0 %v848_v4  ;;  %320 = vmatprep.mubr.bf16.mxu1 %v848_v4  ;;  %v816_v6 = vld [vmem:[%s171_s4 + $0x4] ss:$16 sps:$4 sm:$0xff]   ;;  %v820_v8 = vld [vmem:[%s171_s4] ss:$16 sps:$4 sm:$0xff]   ;;  %v205_v10 = vld [vmem:[%s965_s2 + $0x8] sm:$0xff]  ;;  %vm241_vm0 = vcmask 130048  }
  0x1d   : > { %814 = vset.pattern.permute.xlu0 %v848_v4  ;;  %815 = vset.pattern.permute.xlu1 %v848_v4  ;;  %v822_v11 = vld [vmem:[%s964_s1] sm:$0xff]   ;;  %v558_v12 = vld [vmem:[%s965_s2 + $0x1c] sm:$0x1]  ;;  %v344_v13 = vld [vmem:[%s965_s2 + $0x10] sm:$0xff]  ;;  %vm454_vm1 = vcmask 1043456   ;;  %vm450_vm2 = vcmask 64512  }
  0x1e   : > { %208 = vperm.xlu0 %814, %v204_v5   ;;  %259 = vmatprep.subr.bf16.mxu0 %v816_v6  ;;  %v444_v14 = vld [vmem:[%s965_s2 + $0x18] sm:$0xf]  ;;  %v339_v45 = vld [vmem:[%s964_s1 + $0x8] sm:$0xf]  ;;  %v439_v6 = vld [vmem:[%s964_s1 + $0xc] sm:$0x3] }
  0x1f   : > { %302 = vmatprep.subr.bf16.mxu1 %v818_v7  ;;  %260 = vmatpush1.bf16.msra.mxu0 %v820_v8  ;;  %vm572_vm3 = vcmask 1041408   ;;  %vm568_vm4 = vcmask 31744   ;;  %s971_s26 = smov (!%p193_p8, %s766_s26), 11 }
  0x20   : > { %303 = vmatpush1.bf16.msra.mxu1 %v821_v9  ;;  %347 = vperm.xlu1 %815, %v344_v13   ;;  %s195_s27 = scalar_lea.vmem %s966_s3, %s971_s26 }
  0x22   : > { %213 = vperm.xlu0 %814, %v205_v10   ;;  %772 = vmatmul.mubr.msk.bf16.vlgmr.msra.gmra.mxu0 %vm241_vm0, %v822_v11 }
  0x23   : > { %773 = vmatmul.mubr.msk.bf16.vlgmr.msra.gmra.mxu1 %vm241_vm0, %v822_v11  ;;  %385 = vmatprep.mubr.bf16.mxu0 %v848_v4 }
  0x24   : > { %426 = vmatprep.mubr.bf16.mxu1 %v848_v4  ;;  %447 = vperm.xlu1 %815, %v444_v14  }
  0x26   : > { %561 = vperm.xlu0 %814, %v558_v12  }
  0x99   : > { %v209_v15 = vpop.permute.xlu0 %208 }
  0x9b   : > { %v348_v46 = vpop.permute.xlu1 %347 }
  0x9d   : > { %v214_v20 = vpop.permute.xlu0 %213 }
  0x9f   : > { %v448_v7 = vpop.permute.xlu1 %447 }
  0xe2   : > { %v279_v16 = vpop.f32.mrf.mxu0 }
  0xe3   : > { %v322_v17 = vpop.f32.mrf.mxu1  ;;  %v280_v27 = vadd.f32 %v279_v16, %v209_v15 }
  0xe4   : > { %v281_v18 = vpop.f32.mrf.mxu0  ;;  %v323_v28 = vadd.f32 %v322_v17, %v209_v15 }
  0xe5   : > { %v324_v19 = vpop.f32.mrf.mxu1  ;;  %v282_v23 = vadd.f32 %v281_v18, %v209_v15  ;;  %v331_v39 = vmax.f32 %v280_v27, 0.0 }
  0xe6   : > { %v283_v21 = vpop.f32.mrf.mxu0  ;;  %v325_v24 = vadd.f32 %v324_v19, %v209_v15  ;;  %v333_v40 = vmax.f32 %v323_v28, 0.0 }
  0xe7   : > { %v326_v22 = vpop.f32.mrf.mxu1  ;;  %v284_v25 = vadd.f32 %v283_v21, %v214_v20  ;;  %v332_v35 = vmax.f32 %v282_v23, 0.0 }
  0xe8   : > { %v327_v26 = vadd.f32 %v326_v22, %v214_v20  ;;  %v285_v29 = vpop.f32.mrf.mxu0  ;;  %v334_v36 = vmax.f32 %v325_v24, 0.0 }
  0xe9   : > { %v328_v30 = vpop.f32.mrf.mxu1  ;;  %v286_v31 = vadd.f32 %v285_v29, %v214_v20  ;;  %v335_v33 = vmax.f32 %v284_v25, 0.0 }
  0xea   : > { %v329_v32 = vadd.f32 %v328_v30, %v214_v20  ;;  %v337_v34 = vmax.f32 %v327_v26, 0.0 }
  0xeb   : > { %v336_v37 = vmax.f32 %v286_v31, 0.0  ;;  %v340_v43 = vpack.c.bf16 %v335_v33, %v331_v39  ;;  %v849_v31 = vmov 1966171168   ;;  %v676_v33 = vlaneseq }
  0xec   : > { %v338_v38 = vmax.f32 %v329_v32, 0.0  ;;  %v342_v44 = vpack.c.bf16 %v337_v34, %v333_v40  ;;  %v674_v32 = vunpack.c.l.s4 %v849_v31 }
  0xed   : > { %v341_v41 = vpack.c.bf16 %v336_v37, %v332_v35  ;;  %v677_v35 = vshrl.u32 %v676_v33, 7  ;;  %vm698_vm5 = vcmp.lt.s32.totalorder %v676_v33, 512 }
  0xee   : > { %v343_v42 = vpack.c.bf16 %v338_v38, %v334_v36  ;;  %v675_v34 = vunpack.c.0.s8 %v674_v32  ;;  %v562_v38 = vpop.permute.xlu0 %561 }
  0xef   : > { %367 = vmatprep.subr.bf16.mxu0 %v341_v41 }
  0xf0   : > { %408 = vmatprep.subr.bf16.mxu1 %v343_v42  ;;  %368 = vmatpush1.bf16.msra.mxu0 %v340_v43  ;;  %v678_v40 = vsub.s32 %v675_v34, %v677_v35 }
  0xf1   : > { %409 = vmatpush1.bf16.msra.mxu1 %v342_v44 }
  0xf3   : > { %774 = vmatmul.mubr.msk.bf16.vlgmr.msra.gmra.mxu0 %vm241_vm0, %v339_v45 }
  0xf4   : > { %775 = vmatmul.mubr.msk.bf16.vlgmr.msra.gmra.mxu1 %vm241_vm0, %v339_v45  ;;  %499 = vmatprep.mubr.bf16.mxu0 %v848_v4 }
  0xf5   : > { %540 = vmatprep.mubr.bf16.mxu1 %v848_v4 }
 0x1b3   : > { %v387_v47 = vpop.f32.mrf.mxu0 }
 0x1b4   : > { %v428_v48 = vpop.f32.mrf.mxu1  ;;  %v388_v49 = vadd.f32 %v387_v47, %v348_v46 }
 0x1b5   : > { %v429_v50 = vadd.f32 %v428_v48, %v348_v46  ;;  %v389_v51 = vpop.f32.mrf.mxu0 }
 0x1b6   : > { %v430_v52 = vpop.f32.mrf.mxu1  ;;  %v435_v53 = vmax.f32 %v388_v49, 0.0  ;;  %v390_v55 = vadd.f32 %v389_v51, %v348_v46 }
 0x1b7   : > { %v437_v54 = vmax.f32 %v429_v50, 0.0  ;;  %v431_v56 = vadd.f32 %v430_v52, %v348_v46  ;;  %v391_v57 = vpop.f32.mrf.mxu0 }
 0x1b8   : > { %v432_v58 = vpop.f32.mrf.mxu1  ;;  %v440_v59 = vpack.c.bf16 %v435_v53, %v435_v53  ;;  %v436_v61 = vmax.f32 %v390_v55, 0.0 }
 0x1b9   : > { %v442_v60 = vpack.c.bf16 %v437_v54, %v437_v54  ;;  %v438_v62 = vmax.f32 %v431_v56, 0.0  ;;  %v392_v63 = vpop.f32.mrf.mxu0 }
 0x1ba   : > { %v433_v0 = vpop.f32.mrf.mxu1  ;;  %v441_v1 = vpack.c.bf16 %v436_v61, %v436_v61  ;;  %v456_v3 = vsel %vm454_vm1, %v440_v59, 0 }
 0x1bb   : > { %v443_v2 = vpack.c.bf16 %v438_v62, %v438_v62  ;;  %v462_v5 = vsel %vm454_vm1, %v442_v60, 0 }
 0x1bc   : > { %776 = vmatprep.subr.msk.bf16.mxu0 %vm454_vm1, %v441_v1 }
 0x1bd   : > { %778 = vmatprep.subr.msk.bf16.mxu1 %vm454_vm1, %v443_v2  ;;  %482 = vmatpush1.bf16.msra.mxu0 %v456_v3 }
 0x1be   : > { %523 = vmatpush1.bf16.msra.mxu1 %v462_v5 }
 0x1c0   : > { %777 = vmatmul.mubr.msk.bf16.vlgmr.msra.gmra.mxu0 %vm450_vm2, %v439_v6 }
 0x1c1   : > { %779 = vmatmul.mubr.msk.bf16.vlgmr.msra.gmra.mxu1 %vm450_vm2, %v439_v6  ;;  %617 = vmatprep.mubr.bf16.mxu0 %v848_v4 }
 0x1c2   : > { %658 = vmatprep.mubr.bf16.mxu1 %v848_v4  ;;  %v823_v4 = vld [vmem:[%s964_s1 + $0xc] ss:$0 sps:$4 sm:$0x44]  }
 0x1c3   : > { %v567_v30 = vrot.slane %v823_v4, 2 }
 0x280   : > { %v501_v8 = vpop.f32.mrf.mxu0 }
 0x281   : > { %v542_v9 = vpop.f32.mrf.mxu1  ;;  %v502_v10 = vadd.f32 %v501_v8, %v448_v7 }
 0x282   : > { %v543_v11 = vadd.f32 %v542_v9, %v448_v7  ;;  %v503_v12 = vpop.f32.mrf.mxu0 }
 0x283   : > { %v544_v13 = vpop.f32.mrf.mxu1  ;;  %v549_v14 = vmax.f32 %v502_v10, 0.0  ;;  %v504_v16 = vadd.f32 %v503_v12, %v448_v7 }
 0x284   : > { %v551_v15 = vmax.f32 %v543_v11, 0.0  ;;  %v545_v17 = vadd.f32 %v544_v13, %v448_v7  ;;  %v505_v18 = vpop.f32.mrf.mxu0 }
 0x285   : > { %v546_v19 = vpop.f32.mrf.mxu1  ;;  %v554_v20 = vpack.c.bf16 %v549_v14, %v549_v14  ;;  %v550_v22 = vmax.f32 %v504_v16, 0.0 }
 0x286   : > { %v556_v21 = vpack.c.bf16 %v551_v15, %v551_v15  ;;  %v552_v23 = vmax.f32 %v545_v17, 0.0  ;;  %v506_v24 = vpop.f32.mrf.mxu0 }
 0x287   : > { %v547_v25 = vpop.f32.mrf.mxu1  ;;  %v555_v26 = vpack.c.bf16 %v550_v22, %v550_v22  ;;  %v574_v28 = vsel %vm572_vm3, %v554_v20, 0 }
 0x288   : > { %v557_v27 = vpack.c.bf16 %v552_v23, %v552_v23  ;;  %v580_v29 = vsel %vm572_vm3, %v556_v21, 0 }
 0x289   : > { %781 = vmatprep.subr.msk.bf16.mxu0 %vm572_vm3, %v555_v26 }
 0x28a   : > { %783 = vmatprep.subr.msk.bf16.mxu1 %vm572_vm3, %v557_v27  ;;  %600 = vmatpush1.bf16.msra.mxu0 %v574_v28 }
 0x28b   : > { %641 = vmatpush1.bf16.msra.mxu1 %v580_v29 }
 0x28d   : > { %782 = vmatmul.mubr.msk.bf16.vlgmr.msra.gmra.mxu0 %vm568_vm4, %v567_v30 }
 0x28e   : > { %784 = vmatmul.mubr.msk.bf16.vlgmr.msra.gmra.mxu1 %vm568_vm4, %v567_v30 }
 0x34d   : > { %v619_v36 = vpop.f32.mrf.mxu0 }
 0x34e   : > { %v660_v37 = vpop.f32.mrf.mxu1  ;;  %v620_v42 = vadd.f32 %v619_v36, %v562_v38 }
 0x34f   : > { %v621_v39 = vpop.f32.mrf.mxu0  ;;  %v661_v43 = vadd.f32 %v660_v37, %v562_v38 }
 0x350   : > { %v662_v41 = vpop.f32.mrf.mxu1  ;;  %v622_v44 = vadd.f32 %v621_v39, %v562_v38 }
 0x351   : > { %v663_v45 = vadd.f32 %v662_v41, %v562_v38  ;;  %v623_v46 = vpop.f32.mrf.mxu0 }
 0x352   : > { %v664_v47 = vpop.f32.mrf.mxu1  ;;  %v671_v48 = vcombine.low %v620_v42, %v622_v44 }
 0x353   : > { %v672_v49 = vcombine.low %v661_v43, %v663_v45  ;;  %v624_v50 = vpop.f32.mrf.mxu0 }
 0x354   : > { %v665_v51 = vpop.f32.mrf.mxu1  ;;  %v679_v52 = vrot.slane %v671_v48, %v678_v40 }
 0x355   : > { %v686_v53 = vrot.slane %v672_v49, %v678_v40 }
 0x357   : > { %v687_v54 = vcombine.low %v679_v52, %v686_v53 }
 0x359   : > { %v694_v55 = vrot.slane %v687_v54, %v678_v40 }
 0x35b   : > { %700 = vst.msk [vmem:[%s195_s27] sm:$0xf] %vm698_vm5, %v694_v55 }
 0x35c PF: > { %p10_p9 = scmp.ge.s32.totalorder %s887_s16, 5   ;;  %s967_s12 = smov %s842_s13 }
 0x35d   : > { %s968_s13 = smov %s896_s19  ;;  %s969_s14 = smov %s887_s16 }
 0x35e   :  { %12 = sbr.rel (!%p10_p9) target bundleno = 2 (0x2), region = 90 }

</bundles_post_ra>
